<compile_context>
chip_gen: v5e
topology: v5e:2x2
jax: 0.10.0
libtpu: 0.0.40
codegen_flags: <defaults>
</compile_context>

<pallas_src>
import functools

import jax
import jax.numpy as jnp
from jax.experimental import pallas as pl
from jax.experimental.pallas import tpu as pltpu


def _round_up(x, m):
    return (x + m - 1) // m * m


# ---------------------------------------------------------------------------
# Kernel
# ---------------------------------------------------------------------------
def mongenet_kernel(in_ref, w1p_ref, w2t_ref, b2_ref, out_ref, *, half):
    """One batch tile.

    in_ref : (8, TB)      rows = [v1x, v2x, v3x, v1y, v2y, v3y, rand, ones]
    w1p_ref: (H, 8)       cols 2/5/6 = W1 rows for (v3x, v3y, rand), col 7 = b1
    w2t_ref: (2*half, H)  rows [0:N] = r1 weights, rows [half:half+N] = r2 weights
    b2_ref : (2*half, 1)
    out_ref: (2*half, TB) rows [0:half] = x-coords, rows [half:] = y-coords
    """
    v1x = in_ref[0:1, :]
    v2x = in_ref[1:2, :]
    v3x = in_ref[2:3, :]
    v1y = in_ref[3:4, :]
    v2y = in_ref[4:5, :]
    v3y = in_ref[5:6, :]

    # ---- Linear(3, H) + bias as a single MXU matmul over the padded 8-row slab
    h = jnp.dot(w1p_ref[...], in_ref[...],
                preferred_element_type=jnp.float32)          # (H, TB)
    h = jnp.maximum(h, 0.0)
    # TODO(synk): Dropout is a no-op here (eval-mode / dropout_ratio=0 semantics).

    # ---- Linear(H, 2N) on the MXU (K=128), outputs sublane-padded
    z = jnp.dot(w2t_ref[...], h,
                preferred_element_type=jnp.float32) + b2_ref[...]   # (2*half, TB)
    # Sigmoid = 1 / (1 + exp(-z)): exp on the EUP, reciprocal avoids the
    # stable-logistic lowering's extra VALU selects.  approx=False to stay
    # within the 2e-3 correctness tolerance (approx=True is a free further
    # ~few-% win if a looser tolerance is acceptable).
    s = pl.reciprocal(1.0 + jnp.exp(-z), approx=False)

    r1 = s[0:half, :]          # (half, TB) — aligned sublane slice
    r2 = s[half:, :]

    # ---- LowDistotionParametrization
    mask = r2 > r1
    r1n = jnp.where(mask, r1 * 0.5, r1 - 0.5 * r2)
    r2n = jnp.where(mask, r2 - r1n, r2 * 0.5)
    w3 = 1.0 - r1n - r2n

    out_ref[0:half, :] = r1n * v1x + r2n * v2x + w3 * v3x   # x-coords
    out_ref[half:, :] = r1n * v1y + r2n * v2y + w3 * v3y    # y-coords


# ---------------------------------------------------------------------------
# Parameter handling
# ---------------------------------------------------------------------------
def init_params(key, max_points=4, hidden=128):
    """Deterministic PyTorch-Linear-style init for the '2_hl' architecture."""
    N = (1 + max_points) * max_points // 2
    k1, k2, k3, k4 = jax.random.split(key, 4)
    bound1 = 1.0 / jnp.sqrt(3.0)
    W1 = jax.random.uniform(k1, (3, hidden), jnp.float32, -bound1, bound1)
    b1 = jax.random.uniform(k2, (hidden,), jnp.float32, -bound1, bound1)
    bound2 = 1.0 / jnp.sqrt(float(hidden))
    W2 = jax.random.uniform(k3, (hidden, 2 * N), jnp.float32, -bound2, bound2)
    b2 = jax.random.uniform(k4, (2 * N,), jnp.float32, -bound2, bound2)
    return W1, b1, W2, b2


def pack_params(W1, b1, W2, b2, max_points):
    """Hoisted layout transforms: fold b1 into W1, de-interleave W2, pad halves."""
    hidden = W1.shape[1]
    N = W2.shape[1] // 2
    half = _round_up(N, 8)           # sublane-aligned half-block height (16 for N=10)

    # Layer-1 weights folded into one (H, 8) matrix acting on the padded input
    # slab rows [v1x, v2x, v3x, v1y, v2y, v3y, rand, ones].
    W1p = jnp.zeros((hidden, 8), jnp.float32)
    W1p = W1p.at[:, 2].set(jnp.asarray(W1[0, :], jnp.float32))   # * v3x
    W1p = W1p.at[:, 5].set(jnp.asarray(W1[1, :], jnp.float32))   # * v3y
    W1p = W1p.at[:, 6].set(jnp.asarray(W1[2, :], jnp.float32))   # * rand
    W1p = W1p.at[:, 7].set(jnp.asarray(b1, jnp.float32))         # * ones -> bias

    # De-interleave: even W2 columns produce r1, odd columns produce r2.
    W2Tp = jnp.zeros((2 * half, hidden), jnp.float32)
    W2Tp = W2Tp.at[0:N, :].set(W2[:, 0::2].T)
    W2Tp = W2Tp.at[half:half + N, :].set(W2[:, 1::2].T)
    b2c = jnp.zeros((2 * half, 1), jnp.float32)
    b2c = b2c.at[0:N, 0].set(b2[0::2])
    b2c = b2c.at[half:half + N, 0].set(b2[1::2])

    return dict(W1p=W1p, W2Tp=W2Tp, b2c=b2c,
                max_points=int(max_points), N=int(N),
                half=int(half), hidden=int(hidden))


# ---------------------------------------------------------------------------
# Forward wrapper
# ---------------------------------------------------------------------------
def mongenet_forward(x, rand_in, params, *, tile_batch=2048, raw_output=False):
    """x: (b, 3, 2) float32, rand_in: (b, 1) float32.

    Returns (out, output_index) matching MongeNet.forward:
      out: (b, N, 2), output_index: (N,) int32.
    With raw_output=True, returns the kernel's lane-major (2*half, B_pad)
    buffer instead (x-coords in rows [0:N], y-coords in rows [half:half+N]),
    skipping the extra HBM relayout pass.
    """
    b = x.shape[0]
    N, half, hidden = params["N"], params["half"], params["hidden"]

    # Lane-dense batch tiling: TB is always a multiple of 128.
    tile_batch = max(128, _round_up(int(tile_batch), 128))
    B0 = _round_up(b, 128)
    if b >= 256:
        # >=2 tiles so the "parallel" grid axis feeds both v7x TensorCores.
        TB = min(tile_batch, _round_up((B0 + 1) // 2, 128))
    else:
        TB = min(tile_batch, B0)
    TB = _round_up(TB, 128)
    B_pad = _round_up(b, TB)
    n_tiles = B_pad // TB

    # Build the transposed (8, b) input slab: one exact (8, 128) sublane block
    # per 128 batch elements -> perfectly tile-aligned DMA.
    vx = x[:, :, 0]                                              # (b, 3)
    vy = x[:, :, 1]                                              # (b, 3)
    ones = jnp.ones((1, b), jnp.float32)
    inT = jnp.concatenate([vx.T, vy.T, rand_in.T, ones], axis=0)  # (8, b)
    inT = inT.astype(jnp.float32)
    if B_pad != b:
        inT = jnp.pad(inT, ((0, 0), (0, B_pad - b)))

    kernel = functools.partial(mongenet_kernel, half=half)

    out2 = pl.pallas_call(
        kernel,
        grid=(n_tiles,),
        in_specs=[
            pl.BlockSpec((8, TB), lambda i: (0, i)),             # batch-tiled input
            pl.BlockSpec((hidden, 8), lambda i: (0, 0)),         # weights stay resident
            pl.BlockSpec((2 * half, hidden), lambda i: (0, 0)),
            pl.BlockSpec((2 * half, 1), lambda i: (0, 0)),
        ],
        out_specs=pl.BlockSpec((2 * half, TB), lambda i: (0, i)),
        out_shape=jax.ShapeDtypeStruct((2 * half, B_pad), jnp.float32),
        compiler_params=pltpu.CompilerParams(
            dimension_semantics=("parallel",)),                  # dual-TC on v7x
    )(inT, params["W1p"], params["W2Tp"], params["b2c"])

    # output_index: [1, 2,2, 3,3,3, ...]
    # TODO(synk): int32 here vs PyTorch's int64 .long() (no effect on indexing).
    idx = jnp.concatenate(
        [jnp.full((i,), i, dtype=jnp.int32)
         for i in range(1, params["max_points"] + 1)])

    if raw_output:
        # Rows [N:half] and [half+N:] are padding; consumers must slice them off.
        return out2, idx

    # Re-assemble (b, N, 2): rows [0:N] are x-coords, rows [half:half+N] y-coords.
    # NOTE: this is a separate XLA relayout pass over the output; use
    # raw_output=True to avoid it when the consumer accepts the raw layout.
    out = jnp.stack([out2[0:N, 0:b].T, out2[half:half + N, 0:b].T], axis=-1)
    return out, idx


# ---------------------------------------------------------------------------
# Pure-JAX reference (mirrors the PyTorch module) for a correctness check
# ---------------------------------------------------------------------------
def mongenet_reference(x, rand_in, W1, b1, W2, b2, max_points):
    b = x.shape[0]
    N = (1 + max_points) * max_points // 2
    hp = jax.lax.Precision.HIGHEST
    inp = jnp.concatenate([x[:, 2, :], rand_in], axis=-1)             # (b, 3)
    h = jnp.maximum(jnp.dot(inp, W1, precision=hp) + b1, 0.0)
    s = jax.nn.sigmoid(jnp.dot(h, W2, precision=hp) + b2).reshape(b, N, 2)
    r1, r2 = s[:, :, 0:1], s[:, :, 1:2]
    v1, v2, v3 = x[:, 0:1, :], x[:, 1:2, :], x[:, 2:3, :]
    mask = r2 > r1
    r1n = jnp.where(mask, r1 * 0.5, r1 - 0.5 * r2)
    r2n = jnp.where(mask, r2 - r1n, r2 * 0.5)
    return r1n * v1 + r2n * v2 + (1.0 - r1n - r2n) * v3


if __name__ == "__main__":
    key = jax.random.PRNGKey(0)
    kx, kp, kr = jax.random.split(key, 3)

    b, max_points, hidden = 8, 4, 128
    x = jax.random.normal(kx, (b, 3, 2), dtype=jnp.float32)      # (b, 3 verts, 2 coords)
    W1, b1, W2, b2 = init_params(kp, max_points=max_points, hidden=hidden)
    params = pack_params(W1, b1, W2, b2, max_points)             # hoisted layout work

    # random_input='normal': clamp(randn(b,1), -1, 1)
    rand_in = jnp.clip(jax.random.normal(kr, (b, 1), dtype=jnp.float32), -1.0, 1.0)

    out, output_index = mongenet_forward(x, rand_in, params)
    out = jax.block_until_ready(out)
    output_index = jax.block_until_ready(output_index)

    N = (1 + max_points) * max_points // 2
    assert out.shape == (b, N, 2), out.shape
    assert output_index.shape == (N,), output_index.shape

    ref = jax.block_until_ready(
        mongenet_reference(x, rand_in, W1, b1, W2, b2, max_points))
    # Kernel matmuls use default Mosaic f32 MXU precision vs Precision.HIGHEST
    # in the reference; 2e-3 tolerance covers the gap at this hidden size.
    assert jnp.allclose(out, ref, atol=2e-3, rtol=2e-3), (
        float(jnp.max(jnp.abs(out - ref))))

    print("KERNEL_OK")
</pallas_src>

<mosaic_0001>
module attributes {stable_mosaic.version = 11 : i64} {
  func.func @mongenet_kernel(%arg0: i32, %arg1: memref<8x128xf32, #tpu.memory_space<vmem>>, %arg2: memref<128x8xf32, #tpu.memory_space<vmem>>, %arg3: memref<32x128xf32, #tpu.memory_space<vmem>>, %arg4: memref<32x1xf32, #tpu.memory_space<vmem>>, %arg5: memref<32x128xf32, #tpu.memory_space<vmem>>) attributes {dimension_semantics = [#tpu.dimension_semantics<parallel>], iteration_bounds = array<i64: 1>, scalar_prefetch = 0 : i64, scratch_operands = 0 : i64, tpu.core_type = #tpu.core_type<tc>, window_params = [{transform_indices = @transform_0, window_bounds = array<i64: 8, 128>}, {pipeline_mode = #tpu.pipeline_mode<synchronous>, transform_indices = @transform_1, window_bounds = array<i64: 128, 8>}, {pipeline_mode = #tpu.pipeline_mode<synchronous>, transform_indices = @transform_2, window_bounds = array<i64: 32, 128>}, {pipeline_mode = #tpu.pipeline_mode<synchronous>, transform_indices = @transform_3, window_bounds = array<i64: 32, 1>}, {transform_indices = @transform_4, window_bounds = array<i64: 32, 128>}]} {
    %c0 = arith.constant 0 : index
    %c0_0 = arith.constant 0 : index
    %0 = vector.load %arg1[%c0, %c0_0] : memref<8x128xf32, #tpu.memory_space<vmem>>, vector<1x128xf32>
    %c1 = arith.constant 1 : index
    %c0_1 = arith.constant 0 : index
    %1 = vector.load %arg1[%c1, %c0_1] : memref<8x128xf32, #tpu.memory_space<vmem>>, vector<1x128xf32>
    %c2 = arith.constant 2 : index
    %c0_2 = arith.constant 0 : index
    %2 = vector.load %arg1[%c2, %c0_2] : memref<8x128xf32, #tpu.memory_space<vmem>>, vector<1x128xf32>
    %c3 = arith.constant 3 : index
    %c0_3 = arith.constant 0 : index
    %3 = vector.load %arg1[%c3, %c0_3] : memref<8x128xf32, #tpu.memory_space<vmem>>, vector<1x128xf32>
    %c4 = arith.constant 4 : index
    %c0_4 = arith.constant 0 : index
    %4 = vector.load %arg1[%c4, %c0_4] : memref<8x128xf32, #tpu.memory_space<vmem>>, vector<1x128xf32>
    %c5 = arith.constant 5 : index
    %c0_5 = arith.constant 0 : index
    %5 = vector.load %arg1[%c5, %c0_5] : memref<8x128xf32, #tpu.memory_space<vmem>>, vector<1x128xf32>
    %c0_6 = arith.constant 0 : index
    %c0_7 = arith.constant 0 : index
    %6 = vector.load %arg2[%c0_6, %c0_7] : memref<128x8xf32, #tpu.memory_space<vmem>>, vector<128x8xf32>
    %c0_8 = arith.constant 0 : index
    %c0_9 = arith.constant 0 : index
    %7 = vector.load %arg1[%c0_8, %c0_9] : memref<8x128xf32, #tpu.memory_space<vmem>>, vector<8x128xf32>
    %cst = arith.constant dense<0.000000e+00> : vector<128x128xf32>
    %8 = tpu.matmul %6, %7, %cst {dimension_numbers = #tpu.dot_dimension_numbers<[1], [0], [0], [1], [0, 0, 1, 1], [], []>} : vector<128x8xf32>, vector<8x128xf32>, vector<128x128xf32> -> vector<128x128xf32>
    %cst_10 = arith.constant 0.000000e+00 : f32
    %9 = vector.broadcast %cst_10 : f32 to vector<128x128xf32>
    %10 = arith.maximumf %8, %9 : vector<128x128xf32>
    %c0_11 = arith.constant 0 : index
    %c0_12 = arith.constant 0 : index
    %11 = vector.load %arg3[%c0_11, %c0_12] : memref<32x128xf32, #tpu.memory_space<vmem>>, vector<32x128xf32>
    %cst_13 = arith.constant dense<0.000000e+00> : vector<32x128xf32>
    %12 = tpu.matmul %11, %10, %cst_13 {dimension_numbers = #tpu.dot_dimension_numbers<[1], [0], [0], [1], [0, 0, 1, 1], [], []>} : vector<32x128xf32>, vector<128x128xf32>, vector<32x128xf32> -> vector<32x128xf32>
    %c0_14 = arith.constant 0 : index
    %c0_15 = arith.constant 0 : index
    %13 = vector.load %arg4[%c0_14, %c0_15] : memref<32x1xf32, #tpu.memory_space<vmem>>, vector<32x1xf32>
    %14 = vector.broadcast %13 : vector<32x1xf32> to vector<32x128xf32>
    %15 = arith.addf %12, %14 : vector<32x128xf32>
    %cst_16 = arith.constant 0.000000e+00 : f32
    %16 = vector.broadcast %cst_16 : f32 to vector<32x128xf32>
    %17 = arith.subf %16, %15 : vector<32x128xf32>
    %18 = math.exp %17 : vector<32x128xf32>
    %cst_17 = arith.constant 1.000000e+00 : f32
    %19 = vector.broadcast %cst_17 : f32 to vector<32x128xf32>
    %20 = arith.addf %19, %18 : vector<32x128xf32>
    %21 = tpu.reciprocal %20 : vector<32x128xf32> -> vector<32x128xf32>
    %22 = vector.extract_strided_slice %21 {offsets = [0, 0], sizes = [16, 128], strides = [1, 1]} : vector<32x128xf32> to vector<16x128xf32>
    %23 = vector.extract_strided_slice %21 {offsets = [16, 0], sizes = [16, 128], strides = [1, 1]} : vector<32x128xf32> to vector<16x128xf32>
    %24 = arith.cmpf ogt, %23, %22 : vector<16x128xf32>
    %cst_18 = arith.constant 5.000000e-01 : f32
    %25 = vector.broadcast %cst_18 : f32 to vector<16x128xf32>
    %26 = arith.mulf %22, %25 : vector<16x128xf32>
    %cst_19 = arith.constant 5.000000e-01 : f32
    %27 = vector.broadcast %cst_19 : f32 to vector<16x128xf32>
    %28 = arith.mulf %27, %23 : vector<16x128xf32>
    %29 = arith.subf %22, %28 : vector<16x128xf32>
    %30 = arith.select %24, %26, %29 : vector<16x128xi1>, vector<16x128xf32>
    %31 = arith.subf %23, %30 : vector<16x128xf32>
    %cst_20 = arith.constant 5.000000e-01 : f32
    %32 = vector.broadcast %cst_20 : f32 to vector<16x128xf32>
    %33 = arith.mulf %23, %32 : vector<16x128xf32>
    %34 = arith.select %24, %31, %33 : vector<16x128xi1>, vector<16x128xf32>
    %cst_21 = arith.constant 1.000000e+00 : f32
    %35 = vector.broadcast %cst_21 : f32 to vector<16x128xf32>
    %36 = arith.subf %35, %30 : vector<16x128xf32>
    %37 = arith.subf %36, %34 : vector<16x128xf32>
    %38 = vector.broadcast %0 : vector<1x128xf32> to vector<16x128xf32>
    %39 = arith.mulf %30, %38 : vector<16x128xf32>
    %40 = vector.broadcast %1 : vector<1x128xf32> to vector<16x128xf32>
    %41 = arith.mulf %34, %40 : vector<16x128xf32>
    %42 = arith.addf %39, %41 : vector<16x128xf32>
    %43 = vector.broadcast %2 : vector<1x128xf32> to vector<16x128xf32>
    %44 = arith.mulf %37, %43 : vector<16x128xf32>
    %45 = arith.addf %42, %44 : vector<16x128xf32>
    %c0_22 = arith.constant 0 : index
    %c0_23 = arith.constant 0 : index
    %46 = vector.load %arg5[%c0_22, %c0_23] : memref<32x128xf32, #tpu.memory_space<vmem>>, vector<16x128xf32>
    tpu.vector_store %arg5[%c0_22, %c0_23], %45 {strides = array<i32>} : memref<32x128xf32, #tpu.memory_space<vmem>>, vector<16x128xf32>,
    %47 = vector.broadcast %3 : vector<1x128xf32> to vector<16x128xf32>
    %48 = arith.mulf %30, %47 : vector<16x128xf32>
    %49 = vector.broadcast %4 : vector<1x128xf32> to vector<16x128xf32>
    %50 = arith.mulf %34, %49 : vector<16x128xf32>
    %51 = arith.addf %48, %50 : vector<16x128xf32>
    %52 = vector.broadcast %5 : vector<1x128xf32> to vector<16x128xf32>
    %53 = arith.mulf %37, %52 : vector<16x128xf32>
    %54 = arith.addf %51, %53 : vector<16x128xf32>
    %c16 = arith.constant 16 : index
    %c0_24 = arith.constant 0 : index
    %55 = vector.load %arg5[%c16, %c0_24] : memref<32x128xf32, #tpu.memory_space<vmem>>, vector<16x128xf32>
    tpu.vector_store %arg5[%c16, %c0_24], %54 {strides = array<i32>} : memref<32x128xf32, #tpu.memory_space<vmem>>, vector<16x128xf32>,
    return
  }
  func.func @transform_0(%arg0: i32) -> (i32, i32) {
    %c0_i32 = arith.constant 0 : i32
    %c0_i32_0 = arith.constant 0 : i32
    return %c0_i32, %arg0 : i32, i32
  }
  func.func @transform_1(%arg0: i32) -> (i32, i32) {
    %c0_i32 = arith.constant 0 : i32
    %c0_i32_0 = arith.constant 0 : i32
    %c0_i32_1 = arith.constant 0 : i32
    return %c0_i32, %c0_i32_0 : i32, i32
  }
  func.func @transform_2(%arg0: i32) -> (i32, i32) {
    %c0_i32 = arith.constant 0 : i32
    %c0_i32_0 = arith.constant 0 : i32
    %c0_i32_1 = arith.constant 0 : i32
    return %c0_i32, %c0_i32_0 : i32, i32
  }
  func.func @transform_3(%arg0: i32) -> (i32, i32) {
    %c0_i32 = arith.constant 0 : i32
    %c0_i32_0 = arith.constant 0 : i32
    %c0_i32_1 = arith.constant 0 : i32
    return %c0_i32, %c0_i32_0 : i32, i32
  }
  func.func @transform_4(%arg0: i32) -> (i32, i32) {
    %c0_i32 = arith.constant 0 : i32
    %c0_i32_0 = arith.constant 0 : i32
    return %c0_i32, %arg0 : i32, i32
  }
}

</mosaic_0001>

<bundles_post_ra>
// kernel: tpu_custom_call.1
= control target key start
LH: loop header
LB: loop body
LE: loop exit
PB: predicated region body
PF: predicated region fallthrough
CT: control target
= control target key end

     0   :  { %vm41_vm0 = vcmask 64512   ;;  %s625_s0 = inlined_call_operand.vmem [shape: f32[8,128], index: 0, kind: input, shape index: {}]   ;;  %s626_s1 = inlined_call_operand.vmem [shape: f32[128,8], index: 1, kind: input, shape index: {}]   ;;  %s627_s2 = inlined_call_operand.vmem [shape: f32[32,128], index: 2, kind: input, shape index: {}]   ;;  %s628_s3 = inlined_call_operand.vmem [shape: f32[32,1], index: 3, kind: input, shape index: {}]   ;;  %s629_s4 = inlined_call_operand.hbm [shape: f32[32,128], index: 4, kind: output, shape index: {}]  }
   0x1   :  { %v40_v0 = vld [vmem:[%s625_s0] sm:$0xff]  ;;  %v30_v1 = vld [vmem:[%s626_s1 + $0x30] sm:$0xff] }
   0x2   :  { %v36_v2 = vld [vmem:[%s626_s1 + $0x60] sm:$0xff]  ;;  %382 = vmatpush.msra.mxu2 %v40_v0  ;;  %383 = vmatpush.msra.mxu3 %v40_v0 }
   0x3   :  { %372 = vmatmul.msk.f32.vlgmr.msra.gmra.mxu2 %vm41_vm0, %v30_v1  ;;  %378 = vmatmul.msk.f32.vlgmr.msra.gmra.mxu3 %vm41_vm0, %v36_v2  ;;  %v24_v3 = vld [vmem:[%s626_s1] sm:$0xff] }
   0x4   :  { %105 = vmatpush.msra.mxu0 %v40_v0 }
   0x5   :  { %366 = vmatmul.msk.f32.vlgmr.msra.gmra.mxu0 %vm41_vm0, %v24_v3 }
   0x6   :  { %9 = vsyncpa [#allocation3], 0  ;;  %v31_v4 = vld [vmem:[%s626_s1 + $0x38] sm:$0xff]  ;;  %v37_v5 = vld [vmem:[%s626_s1 + $0x68] sm:$0xff]  ;;  %v454_v34 = vmov 0   ;;  %s354_s24 = sshll.u32 %s629_s4, 4  ;;  %s355_s24 = int_to_ptr.hbm [resolvable:$true] %s354_s24 }
   0x7   :  { %v25_v6 = vld [vmem:[%s626_s1 + $0x8] sm:$0xff]  ;;  %v32_v7 = vld [vmem:[%s626_s1 + $0x40] sm:$0xff]  ;;  %v38_v8 = vld [vmem:[%s626_s1 + $0x70] sm:$0xff]  ;;  %404 = vset.pattern.permute.xlu0 %v454_v34  ;;  %405 = vset.pattern.permute.xlu1 %v454_v34  ;;  %s456_s25 = smov 128   ;;  %s457_s26 = smov 8  }
   0x8   :  { %v26_v9 = vld [vmem:[%s626_s1 + $0x10] sm:$0xff]  ;;  %v33_v10 = vld [vmem:[%s626_s1 + $0x48] sm:$0xff]  ;;  %v39_v11 = vld [vmem:[%s626_s1 + $0x78] sm:$0xff] }
   0x9   :  { %v27_v12 = vld [vmem:[%s626_s1 + $0x18] sm:$0xff]  ;;  %v34_v13 = vld [vmem:[%s626_s1 + $0x50] sm:$0xff]  ;;  %v28_v14 = vld [vmem:[%s626_s1 + $0x20] sm:$0xff] }
   0xa   :  { %v35_v15 = vld [vmem:[%s626_s1 + $0x58] sm:$0xff]  ;;  %v29_v16 = vld [vmem:[%s626_s1 + $0x28] sm:$0xff]  ;;  %v177_v38 = vld [vmem:[%s628_s3 + $0x10] sm:$0xff] }
   0xb   :  { %373 = vmatmul.msk.f32.gmra.mxu2 %vm41_vm0, %v31_v4  ;;  %379 = vmatmul.msk.f32.gmra.mxu3 %vm41_vm0, %v37_v5  ;;  %v175_v39 = vld [vmem:[%s628_s3] sm:$0xff]  ;;  %v178_v45 = vld [vmem:[%s628_s3 + $0x18] sm:$0xff]  ;;  %v176_v46 = vld [vmem:[%s628_s3 + $0x8] sm:$0xff] }
   0xc   :  { %191 = vperm.xlu0 %404, %v177_v38   ;;  %181 = vperm.xlu1 %405, %v175_v39   ;;  %v171_v54 = vld [vmem:[%s627_s2] sm:$0xff]  ;;  %v174_v55 = vld [vmem:[%s627_s2 + $0x18] sm:$0xff]  ;;  %v172_v56 = vld [vmem:[%s627_s2 + $0x8] sm:$0xff] }
   0xd   :  { %367 = vmatmul.msk.f32.gmra.mxu0 %vm41_vm0, %v25_v6  ;;  %v173_v57 = vld [vmem:[%s627_s2 + $0x10] sm:$0xff] }
  0x13   :  { %374 = vmatmul.msk.f32.gmra.mxu2 %vm41_vm0, %v32_v7  ;;  %380 = vmatmul.msk.f32.gmra.mxu3 %vm41_vm0, %v38_v8 }
  0x14   :  { %196 = vperm.xlu0 %404, %v178_v45   ;;  %186 = vperm.xlu1 %405, %v176_v46  }
  0x15   :  { %368 = vmatmul.msk.f32.gmra.mxu0 %vm41_vm0, %v26_v9 }
  0x1b   :  { %375 = vmatmul.msk.f32.gmra.mxu2 %vm41_vm0, %v33_v10  ;;  %381 = vmatmul.msk.f32.gmra.mxu3 %vm41_vm0, %v39_v11 }
  0x1d   :  { %369 = vmatmul.msk.f32.gmra.mxu0 %vm41_vm0, %v27_v12 }
  0x23   :  { %376 = vmatmul.msk.f32.gmra.mxu2 %vm41_vm0, %v34_v13 }
  0x25   :  { %370 = vmatmul.msk.f32.gmra.mxu0 %vm41_vm0, %v28_v14 }
  0x2b   :  { %377 = vmatmul.msk.f32.gmra.mxu2 %vm41_vm0, %v35_v15 }
  0x2d   :  { %371 = vmatmul.msk.f32.gmra.mxu0 %vm41_vm0, %v29_v16 }
  0x7e   :  { %v192_v58 = vpop.permute.xlu0 %191  ;;  %v182_v59 = vpop.permute.xlu1 %181 }
  0x82   :  { %v550_v17 = vpop.f32.mrf.mxu0 }
  0x83   :  { %v155_v53 = vmax.f32 %v550_v17, 0.0 }
  0x86   :  { %v125_v18 = vpop.f32.mrf.mxu2  ;;  %v143_v19 = vpop.f32.mrf.mxu3 }
  0x87   :  { %v167_v32 = vmax.f32 %v143_v19, 0.0  ;;  %v161_v47 = vmax.f32 %v125_v18, 0.0  ;;  %v197_v63 = vpop.permute.xlu0 %196  ;;  %v187_v2 = vpop.permute.xlu1 %186 }
  0x8a   :  { %v552_v20 = vpop.f32.mrf.mxu0 }
  0x8b   :  { %v156_v52 = vmax.f32 %v552_v20, 0.0 }
  0x8e   :  { %v128_v21 = vpop.f32.mrf.mxu2  ;;  %v146_v22 = vpop.f32.mrf.mxu3 }
  0x8f   :  { %v168_v31 = vmax.f32 %v146_v22, 0.0  ;;  %v162_v44 = vmax.f32 %v128_v21, 0.0 }
  0x92   :  { %v113_v25 = vpop.f32.mrf.mxu0 }
  0x93   :  { %v157_v51 = vmax.f32 %v113_v25, 0.0 }
  0x96   :  { %v131_v23 = vpop.f32.mrf.mxu2  ;;  %v149_v24 = vpop.f32.mrf.mxu3 }
  0x97   :  { %v169_v29 = vmax.f32 %v149_v24, 0.0  ;;  %v163_v42 = vmax.f32 %v131_v23, 0.0 }
  0x9a   :  { %v116_v30 = vpop.f32.mrf.mxu0 }
  0x9b   :  { %v158_v50 = vmax.f32 %v116_v30, 0.0 }
  0x9e   :  { %v134_v26 = vpop.f32.mrf.mxu2  ;;  %v152_v27 = vpop.f32.mrf.mxu3 }
  0x9f   :  { %v170_v28 = vmax.f32 %v152_v27, 0.0  ;;  %v164_v41 = vmax.f32 %v134_v26, 0.0 }
  0xa1   :  { %199 = vmatpush.msra.mxu1 %v170_v28  ;;  %384 = vmatpush.msrb.mxu3 %v170_v28 }
  0xa2   :  { %v119_v35 = vpop.f32.mrf.mxu0 }
  0xa3   :  { %200 = vmatpush.msra.mxu1 %v169_v29  ;;  %385 = vmatpush.msrb.mxu3 %v169_v29  ;;  %v159_v49 = vmax.f32 %v119_v35, 0.0 }
  0xa5   :  { %201 = vmatpush.msra.mxu1 %v168_v31  ;;  %386 = vmatpush.msrb.mxu3 %v168_v31 }
  0xa6   :  { %v137_v33 = vpop.f32.mrf.mxu2 }
  0xa7   :  { %202 = vmatpush.msra.mxu1 %v167_v32  ;;  %387 = vmatpush.msrb.mxu3 %v167_v32  ;;  %v165_v40 = vmax.f32 %v137_v33, 0.0 }
  0xaa   :  { %v122_v43 = vpop.f32.mrf.mxu0 }
  0xab   :  { %v160_v48 = vmax.f32 %v122_v43, 0.0 }
  0xae   :  { %v140_v36 = vpop.f32.mrf.mxu2 }
  0xaf   :  { %v166_v37 = vmax.f32 %v140_v36, 0.0 }
  0xb1   :  { %203 = vmatpush.msra.mxu1 %v166_v37  ;;  %388 = vmatpush.msrb.mxu3 %v166_v37 }
  0xb3   :  { %204 = vmatpush.msra.mxu1 %v165_v40  ;;  %389 = vmatpush.msrb.mxu3 %v165_v40 }
  0xb5   :  { %205 = vmatpush.msra.mxu1 %v164_v41  ;;  %390 = vmatpush.msrb.mxu3 %v164_v41 }
  0xb7   :  { %206 = vmatpush.msra.mxu1 %v163_v42  ;;  %391 = vmatpush.msrb.mxu3 %v163_v42 }
  0xb9   :  { %207 = vmatpush.msra.mxu1 %v162_v44  ;;  %392 = vmatpush.msrb.mxu3 %v162_v44 }
  0xbb   :  { %208 = vmatpush.msra.mxu1 %v161_v47  ;;  %393 = vmatpush.msrb.mxu3 %v161_v47 }
  0xbd   :  { %209 = vmatpush.msra.mxu1 %v160_v48  ;;  %394 = vmatpush.msrb.mxu3 %v160_v48 }
  0xbf   :  { %210 = vmatpush.msra.mxu1 %v159_v49  ;;  %395 = vmatpush.msrb.mxu3 %v159_v49 }
  0xc1   :  { %211 = vmatpush.msra.mxu1 %v158_v50  ;;  %396 = vmatpush.msrb.mxu3 %v158_v50 }
  0xc3   :  { %212 = vmatpush.msra.mxu1 %v157_v51  ;;  %397 = vmatpush.msrb.mxu3 %v157_v51 }
  0xc5   :  { %213 = vmatpush.msra.mxu1 %v156_v52  ;;  %398 = vmatpush.msrb.mxu3 %v156_v52 }
  0xc7   :  { %214 = vmatpush.msra.mxu1 %v155_v53  ;;  %399 = vmatpush.msrb.mxu3 %v155_v53 }
  0xc8   :  { %215 = vmatmul.f32.vlgmr.msra.gmra.mxu1 %v171_v54  ;;  %224 = vmatmul.f32.vlgmr.msrb.gmra.mxu3 %v174_v55 }
  0xd0   :  { %218 = vmatmul.f32.gmra.mxu1 %v172_v56 }
  0xd8   :  { %221 = vmatmul.f32.gmra.mxu1 %v173_v57 }
 0x145   :  { %v216_v60 = vpop.f32.mrf.mxu1 }
 0x146   :  { %v217_v61 = vadd.f32 %v216_v60, %v182_v59  ;;  %v406_v60 = vld [vmem:[%s625_s0] ss:$0 sm:$0xff] }
 0x148   :  { %v228_v62 = vsub.f32 0.0, %v217_v61  ;;  %v409_v61 = vld [vmem:[%s625_s0 + $0x3] ss:$0 sm:$0xff] }
 0x14a   :  { %v232_v0 = vmul.f32 1.442695, %v228_v62 }
 0x14b   :  { %v225_v1 = vpop.f32.mrf.mxu3 }
 0x14c   :  { %412 = vpow2.f32 %v232_v0  ;;  %v226_v3 = vadd.f32 %v225_v1, %v197_v63  ;;  %v407_v0 = vld [vmem:[%s625_s0 + $0x1] ss:$0 sm:$0xff]  ;;  %v410_v1 = vld [vmem:[%s625_s0 + $0x4] ss:$0 sm:$0xff] }
 0x14d   :  { %v219_v4 = vpop.f32.mrf.mxu1 }
 0x14e   :  { %v231_v5 = vsub.f32 0.0, %v226_v3  ;;  %v220_v6 = vadd.f32 %v219_v4, %v187_v2 }
 0x150   :  { %v238_v7 = vmul.f32 1.442695, %v231_v5  ;;  %v229_v8 = vsub.f32 0.0, %v220_v6 }
 0x152   :  { %v413_v9 = vpop.eup %412  ;;  %414 = vpow2.f32 %v238_v7  ;;  %v234_v10 = vmul.f32 1.442695, %v229_v8  ;;  %v408_v7 = vld [vmem:[%s625_s0 + $0x2] ss:$0 sm:$0xff]  ;;  %v411_v8 = vld [vmem:[%s625_s0 + $0x5] ss:$0 sm:$0xff] }
 0x153   :  { %v580_v11 = vadd.f32 1.0, %v413_v9  ;;  %s455_s0 = smov [#allocation2]  }
 0x154   :  { %416 = vpow2.f32 %v234_v10  ;;  %s352_s22 = sshll.u32 %s455_s0, 4  ;;  %s353_s22 = int_to_ptr.vmem [resolvable:$true] %s352_s22 }
 0x155   :  { %v222_v12 = vpop.f32.mrf.mxu1  ;;  %418 = vrcp.f32 %v580_v11  ;;  %v253_v48 = vand.u32 2147483647, %v580_v11  ;;  %v255_v49 = vand.u32 2147483648, %v580_v11  ;;  %vm249_vm10 = vweird.f32 %v580_v11 }
 0x156   :  { %v223_v13 = vadd.f32 %v222_v12, %v192_v58 }
 0x157   :  { %vm254_vm14 = vcmp.eq.f32.partialorder %v253_v48, 8.507059e+37  ;;  %v256_v62 = vor.u32 1.1754944e-38, %v255_v49 }
 0x158   :  { %v415_v14 = vpop.eup %414  ;;  %v230_v15 = vsub.f32 0.0, %v223_v13 }
 0x159   :  { %v243_v16 = vadd.f32 1.0, %v415_v14 }
 0x15a   :  { %v417_v17 = vpop.eup %416  ;;  %v236_v18 = vmul.f32 1.442695, %v230_v15 }
 0x15b   :  { %420 = vrcp.f32 %v243_v16  ;;  %v241_v19 = vadd.f32 1.0, %v417_v17  ;;  %v583_v20 = vpop.eup %418  ;;  %v297_v29 = vand.u32 2147483648, %v243_v16  ;;  %v295_v32 = vand.u32 2147483647, %v243_v16 }
 0x15c   :  { %422 = vpow2.f32 %v236_v18  ;;  %v245_v21 = vmul.f32 %v583_v20, %v580_v11  ;;  %vm291_vm2 = vweird.f32 %v243_v16  ;;  %vm250_vm6 = vweird.f32 %v583_v20 }
 0x15d   :  { %424 = vrcp.f32 %v241_v19  ;;  %v269_v36 = vand.u32 2147483648, %v241_v19  ;;  %v298_v37 = vor.u32 1.1754944e-38, %v297_v29  ;;  %v267_v39 = vand.u32 2147483647, %v241_v19  ;;  %vm595_vm11 = vmor %vm249_vm10, %vm250_vm6 }
 0x15e   :  { %v246_v27 = vsub.f32 1.0, %v245_v21  ;;  %vm296_vm5 = vcmp.eq.f32.partialorder %v295_v32, 8.507059e+37  ;;  %vm263_vm7 = vweird.f32 %v241_v19 }
 0x15f   :  { %v270_v46 = vor.u32 1.1754944e-38, %v269_v36  ;;  %vm268_vm9 = vcmp.eq.f32.partialorder %v267_v39, 8.507059e+37 }
 0x160   :  { %v247_v34 = vmul.f32 %v583_v20, %v246_v27 }
 0x161   :  { %v421_v22 = vpop.eup %420 }
 0x162   :  { %v423_v23 = vpop.eup %422  ;;  %v287_v24 = vmul.f32 %v421_v22, %v243_v16  ;;  %vm292_vm1 = vweird.f32 %v421_v22  ;;  %v248_v44 = vadd.f32 %v583_v20, %v247_v34 }
 0x163   :  { %v242_v25 = vadd.f32 1.0, %v423_v23  ;;  %v425_v26 = vpop.eup %424  ;;  %vm293_vm3 = vmor %vm291_vm2, %vm292_vm1 }
 0x164   :  { %v288_v28 = vsub.f32 1.0, %v287_v24  ;;  %v259_v30 = vmul.f32 %v425_v26, %v241_v19  ;;  %vm264_vm4 = vweird.f32 %v425_v26  ;;  %v252_v58 = vsel %vm595_vm11, %v583_v20, %v248_v44 }
 0x165   :  { %426 = vrcp.f32 %v242_v25  ;;  %vm265_vm8 = vmor %vm263_vm7, %vm264_vm4  ;;  %v281_v53 = vand.u32 2147483647, %v242_v25  ;;  %v283_v57 = vand.u32 2147483648, %v242_v25  ;;  %vm277_vm15 = vweird.f32 %v242_v25 }
 0x166   :  { %v289_v31 = vmul.f32 %v421_v22, %v288_v28  ;;  %v260_v33 = vsub.f32 1.0, %v259_v30  ;;  %v257_v5 = vsel %vm254_vm14, %v256_v62, %v252_v58 }
 0x167   :  { %vm282_vm1 = vcmp.eq.f32.partialorder %v281_v53, 8.507059e+37  ;;  %v284_v6 = vor.u32 1.1754944e-38, %v283_v57 }
 0x168   :  { %v290_v35 = vadd.f32 %v421_v22, %v289_v31  ;;  %v261_v38 = vmul.f32 %v425_v26, %v260_v33 }
 0x16a   :  { %v294_v40 = vsel %vm293_vm3, %v421_v22, %v290_v35  ;;  %v262_v43 = vadd.f32 %v425_v26, %v261_v38  ;;  %v302_v22 = vmul.f32 0.5, %v257_v5 }
 0x16b   :  { %v427_v41 = vpop.eup %426  ;;  %v299_v42 = vsel %vm296_vm5, %v298_v37, %v294_v40 }
 0x16c   :  { %v305_v45 = vmul.f32 0.5, %v299_v42  ;;  %v273_v47 = vmul.f32 %v427_v41, %v242_v25  ;;  %v266_v50 = vsel %vm265_vm8, %v425_v26, %v262_v43  ;;  %vm278_vm13 = vweird.f32 %v427_v41 }
 0x16d   :  { %v271_v51 = vsel %vm268_vm9, %v270_v46, %v266_v50  ;;  %vm279_vm0 = vmor %vm277_vm15, %vm278_vm13 }
 0x16e   :  { %v274_v52 = vsub.f32 1.0, %v273_v47  ;;  %vm301_vm12 = vcmp.gt.f32.partialorder %v299_v42, %v271_v51  ;;  %v303_v55 = vmul.f32 0.5, %v271_v51  ;;  %v307_v56 = vsub.f32 %v271_v51, %v305_v45 }
 0x170   :  { %v275_v59 = vmul.f32 %v427_v41, %v274_v52  ;;  %v309_v63 = vsel %vm301_vm12, %v303_v55, %v307_v56 }
 0x171   :  { %v311_v2 = vsub.f32 %v299_v42, %v309_v63  ;;  %v315_v4 = vsub.f32 1.0, %v309_v63  ;;  %v320_v11 = vmul.f32 %v406_v60, %v309_v63  ;;  %v335_v12 = vmul.f32 %v409_v61, %v309_v63 }
 0x172   :  { %v276_v3 = vadd.f32 %v427_v41, %v275_v59 }
 0x173   :  { %v313_v9 = vsel %vm301_vm12, %v311_v2, %v305_v45 }
 0x174   :  { %v280_v10 = vsel %vm279_vm0, %v427_v41, %v276_v3  ;;  %v317_v14 = vsub.f32 %v315_v4, %v313_v9  ;;  %v323_v15 = vmul.f32 %v407_v0, %v313_v9  ;;  %v338_v16 = vmul.f32 %v410_v1, %v313_v9 }
 0x175   :  { %v285_v13 = vsel %vm282_vm1, %v284_v6, %v280_v10 }
 0x176   :  { %v304_v17 = vmul.f32 0.5, %v285_v13  ;;  %v325_v18 = vadd.f32 %v323_v15, %v320_v11  ;;  %v328_v19 = vmul.f32 %v408_v7, %v317_v14  ;;  %v340_v20 = vadd.f32 %v338_v16, %v335_v12 }
 0x177   :  { %v343_v21 = vmul.f32 %v411_v8, %v317_v14  ;;  %vm300_vm2 = vcmp.gt.f32.partialorder %v285_v13, %v257_v5 }
 0x178   :  { %v306_v23 = vsub.f32 %v257_v5, %v304_v17  ;;  %v330_v24 = vadd.f32 %v328_v19, %v325_v18 }
 0x179   :  { %v345_v25 = vadd.f32 %v343_v21, %v340_v20 }
 0x17a   :  { %v308_v26 = vsel %vm300_vm2, %v302_v22, %v306_v23  ;;  %332 = vst [vmem:[#allocation2 + $0x8] sm:$0xff] %v330_v24 }
 0x17b   :  { %v310_v27 = vsub.f32 %v285_v13, %v308_v26  ;;  %v314_v28 = vsub.f32 1.0, %v308_v26  ;;  %347 = vst [vmem:[#allocation2 + $0x18] sm:$0xff] %v345_v25  ;;  %v319_v30 = vmul.f32 %v406_v60, %v308_v26  ;;  %v334_v33 = vmul.f32 %v409_v61, %v308_v26 }
 0x17d   :  { %v312_v29 = vsel %vm300_vm2, %v310_v27, %v304_v17 }
 0x17e   :  { %v316_v31 = vsub.f32 %v314_v28, %v312_v29  ;;  %v322_v32 = vmul.f32 %v407_v0, %v312_v29  ;;  %v337_v34 = vmul.f32 %v410_v1, %v312_v29 }
 0x180   :  { %v324_v35 = vadd.f32 %v322_v32, %v319_v30  ;;  %v327_v36 = vmul.f32 %v408_v7, %v316_v31  ;;  %v339_v37 = vadd.f32 %v337_v34, %v334_v33  ;;  %v342_v38 = vmul.f32 %v411_v8, %v316_v31 }
 0x182   :  { %v329_v39 = vadd.f32 %v327_v36, %v324_v35  ;;  %v344_v40 = vadd.f32 %v342_v38, %v339_v37 }
 0x184   :  { %331 = vst [vmem:[#allocation2] sm:$0xff] %v329_v39 }
 0x185   :  { %346 = vst [vmem:[#allocation2 + $0x10] sm:$0xff] %v344_v40 }
 0x186   :  { %360 = dma.vmem_to_hbm [thread:$0]  %s353_s22, 512, %s355_s24, [#allocation3], %s456_s25, %s456_s25, %s457_s26  }
 0x187   :  { %452 = dma.done.wait [#allocation3], 512  }
 0x188   :  { %453 = vsyncadd [#allocation3], 4294966784 }
 0x189   :  { %365 = vsyncpa [#allocation3], 1 }

</bundles_post_ra>
